<compile_context>
chip_gen: v5e
topology: v5e:2x2
jax: 0.10.0
libtpu: 0.0.40
codegen_flags: <defaults>
</compile_context>

<pallas_src>
import functools
import math

import jax
import jax.numpy as jnp
from jax import lax
from jax.experimental import pallas as pl
from jax.experimental.pallas import tpu as pltpu


def _round_up(x: int, m: int) -> int:
    return (x + m - 1) // m * m


def _xent_block_kernel(lp_ref, tgt_ref, out_ref, *, smoothing, pad_index,
                       n_rows, block_rows, const_term):
    """One grid step: a (tm, V) block of rows -> one lane-dense (1, 128)
    partial-loss row (only lane 0 is non-zero)."""
    i = pl.program_id(0)

    lp = lp_ref[...].astype(jnp.float32)          # (tm, V) log-probabilities
    tgt = tgt_ref[...]                            # (tm, 1) int32 target ids
    tm, vocab = lp.shape

    # Row validity: handles the ragged last block (rows read past n_rows hold
    # unspecified data) and padding rows (target == pad_index).
    row = i * block_rows + lax.broadcasted_iota(jnp.int32, (tm, 1), 0)
    row_ok = (row < n_rows) & (tgt != pad_index)  # (tm, 1) bool

    col = lax.broadcasted_iota(jnp.int32, (tm, vocab), 1)
    is_target = col == tgt                        # one-hot mask (tm, V)

    # lp at the target index of each row, via one-hot masked row-sum.
    lp_t = jnp.sum(jnp.where(is_target, lp, 0.0), axis=-1, keepdims=True)

    if smoothing > 0.0:
        base = smoothing / (vocab - 2)
        # Row sum of lp with the pad column excluded (its target mass is 0).
        lp_sum = jnp.sum(jnp.where(col == pad_index, 0.0, lp),
                         axis=-1, keepdims=True)
        # KLDivLoss(reduction='sum') per non-pad row:
        #   sum_j dist_j*(log dist_j - lp_j)
        #     = const_term - (1-s)*lp[target] - base*(sum_{j!=target,pad} lp_j)
        # with const_term = (1-s)*log(1-s) + s*log(s/(V-2)), precomputed.
        row_loss = (const_term
                    - (1.0 - smoothing) * lp_t
                    - base * (lp_sum - lp_t))
    else:
        # NLLLoss(ignore_index=pad_index, reduction='sum')
        row_loss = -lp_t

    block_loss = jnp.sum(jnp.where(row_ok, row_loss, 0.0))   # scalar partial

    lane = lax.broadcasted_iota(jnp.int32, (1, 128), 1)
    out_ref[...] = jnp.where(lane == 0, block_loss, 0.0)


class XentLoss:
    """Cross-entropy loss with optional label smoothing (Pallas TPU)."""

    def __init__(self, pad_index: int, smoothing: float = 0.1,
                 max_block_rows: int = 512,
                 block_byte_budget: int = 4 * 1024 * 1024):
        self.pad_index = pad_index
        self.smoothing = smoothing
        self.max_block_rows = max_block_rows
        self.block_byte_budget = block_byte_budget

    def __call__(self, log_probs, targets):
        # log_probs: [..., V] float (f32 or bf16); targets: [...] int.
        vocab = log_probs.shape[-1]
        if self.smoothing > 0.0:
            assert vocab > 2, "label smoothing requires vocab_size > 2"

        lp = log_probs.reshape(-1, vocab)
        tgt = targets.reshape(-1, 1).astype(jnp.int32)
        n = lp.shape[0]

        # Row-tile size: as many rows as fit the per-buffer VMEM byte budget
        # (accounting for f32 temporaries), multiple of 8, capped, never
        # larger than the array (the ragged last block is masked in-kernel).
        rows_budget = max(8, (self.block_byte_budget // (vocab * 4)) // 8 * 8)
        if n < 8:
            tm = n
        else:
            tm = min(self.max_block_rows, rows_budget, (n // 8) * 8)
        num_blocks = pl.cdiv(n, tm)

        if self.smoothing > 0.0:
            s = float(self.smoothing)
            base = s / (vocab - 2)
            const_term = s * math.log(base)
            if s < 1.0:
                const_term += (1.0 - s) * math.log(1.0 - s)
        else:
            const_term = 0.0

        kernel = functools.partial(
            _xent_block_kernel,
            smoothing=self.smoothing, pad_index=self.pad_index,
            n_rows=n, block_rows=tm, const_term=const_term)

        partials = pl.pallas_call(
            kernel,
            out_shape=jax.ShapeDtypeStruct((num_blocks, 128), jnp.float32),
            grid_spec=pltpu.PrefetchScalarGridSpec(
                num_scalar_prefetch=0,
                grid=(num_blocks,),
                in_specs=[
                    pl.BlockSpec((tm, vocab), lambda i: (i, 0)),
                    pl.BlockSpec((tm, 1), lambda i: (i, 0)),
                ],
                out_specs=pl.BlockSpec((1, 128), lambda i: (i, 0)),
            ),
            compiler_params=pltpu.CompilerParams(
                dimension_semantics=("parallel",),
                vmem_limit_bytes=40 * 1024 * 1024),
        )(lp, tgt)

        # Tiny (num_blocks, 128) partial array; reduce on the host side of the
        # kernel (still inside jit if the caller jits).
        return jnp.sum(partials)


def _reference_loss(log_probs, targets, pad_index, smoothing):
    """Plain-JAX reference reproducing the PyTorch semantics."""
    vocab = log_probs.shape[-1]
    lp = log_probs.reshape(-1, vocab).astype(jnp.float32)
    tgt = targets.reshape(-1)
    if smoothing > 0.0:
        base = smoothing / (vocab - 2)
        dist = jnp.full((tgt.shape[0], vocab), base, jnp.float32)
        dist = dist.at[jnp.arange(tgt.shape[0]), tgt].set(1.0 - smoothing)
        dist = dist.at[:, pad_index].set(0.0)
        dist = jnp.where((tgt == pad_index)[:, None], 0.0, dist)
        kl = jnp.where(dist > 0.0,
                       dist * (jnp.log(jnp.where(dist > 0.0, dist, 1.0)) - lp),
                       0.0)
        return jnp.sum(kl)
    else:
        picked = lp[jnp.arange(tgt.shape[0]), tgt]
        return -jnp.sum(jnp.where(tgt == pad_index, 0.0, picked))


def _make_inputs(key, batch, seq, vocab, pad_index):
    k1, k2 = jax.random.split(key)
    logits = jax.random.normal(k1, (batch, seq, vocab), jnp.float32)
    log_probs = jax.nn.log_softmax(logits, axis=-1)
    targets = jax.random.randint(k2, (batch, seq), 0, vocab, jnp.int32)
    targets = targets.at[0, 0].set(pad_index)              # force some padding
    if batch > 1:
        targets = targets.at[1, min(3, seq - 1)].set(pad_index)
    return log_probs, targets


if __name__ == "__main__":
    key = jax.random.PRNGKey(0)
    pad_index = 1

    # 1) Label smoothing, single block (batch=2, seq=8, vocab=32).
    lp1, tg1 = _make_inputs(key, batch=2, seq=8, vocab=32, pad_index=pad_index)
    loss1 = jax.block_until_ready(XentLoss(pad_index, 0.1)(lp1, tg1))
    ref1 = _reference_loss(lp1, tg1, pad_index, 0.1)
    assert jnp.allclose(loss1, ref1, rtol=1e-5, atol=1e-5), (loss1, ref1)

    # 2) Label smoothing, ragged last block (n=15 rows) and a wider vocab.
    lp2, tg2 = _make_inputs(jax.random.PRNGKey(1), batch=3, seq=5, vocab=160,
                            pad_index=pad_index)
    loss2 = jax.block_until_ready(XentLoss(pad_index, 0.1)(lp2, tg2))
    ref2 = _reference_loss(lp2, tg2, pad_index, 0.1)
    assert jnp.allclose(loss2, ref2, rtol=1e-5, atol=1e-5), (loss2, ref2)

    # 3) No smoothing (NLLLoss path), multiple grid blocks (max_block_rows=8).
    loss3 = jax.block_until_ready(
        XentLoss(pad_index, 0.0, max_block_rows=8)(lp1, tg1))
    ref3 = _reference_loss(lp1, tg1, pad_index, 0.0)
    assert jnp.allclose(loss3, ref3, rtol=1e-5, atol=1e-5), (loss3, ref3)

    print("KERNEL_OK")
</pallas_src>

<mosaic_0001>
module attributes {stable_mosaic.version = 11 : i64} {
  func.func @_xent_block_kernel(%arg0: i32, %arg1: memref<16x32xf32, #tpu.memory_space<vmem>>, %arg2: memref<16x1xi32, #tpu.memory_space<vmem>>, %arg3: memref<1x128xf32, #tpu.memory_space<vmem>>) attributes {dimension_semantics = [#tpu.dimension_semantics<parallel>], iteration_bounds = array<i64: 1>, scalar_prefetch = 0 : i64, scratch_operands = 0 : i64, tpu.core_type = #tpu.core_type<tc>, window_params = [{transform_indices = @transform_0, window_bounds = array<i64: 16, 32>}, {transform_indices = @transform_1, window_bounds = array<i64: 16, 1>}, {transform_indices = @transform_2, window_bounds = array<i64: 1, 128>}]} {
    %c0 = arith.constant 0 : index
    %c0_0 = arith.constant 0 : index
    %0 = vector.load %arg1[%c0, %c0_0] : memref<16x32xf32, #tpu.memory_space<vmem>>, vector<16x32xf32>
    %c0_1 = arith.constant 0 : index
    %c0_2 = arith.constant 0 : index
    %1 = vector.load %arg2[%c0_1, %c0_2] : memref<16x1xi32, #tpu.memory_space<vmem>>, vector<16x1xi32>
    %c16_i32 = arith.constant 16 : i32
    %2 = arith.muli %arg0, %c16_i32 : i32
    %3 = tpu.iota {dimensions = array<i32: 0>} : vector<16x1xi32>
    %4 = vector.broadcast %2 : i32 to vector<16x1xi32>
    %5 = arith.addi %4, %3 : vector<16x1xi32>
    %c16_i32_3 = arith.constant 16 : i32
    %6 = vector.broadcast %c16_i32_3 : i32 to vector<16x1xi32>
    %7 = arith.cmpi slt, %5, %6 : vector<16x1xi32>
    %c1_i32 = arith.constant 1 : i32
    %8 = vector.broadcast %c1_i32 : i32 to vector<16x1xi32>
    %9 = arith.cmpi ne, %1, %8 : vector<16x1xi32>
    %10 = arith.andi %7, %9 : vector<16x1xi1>
    %11 = tpu.iota {dimensions = array<i32: 1>} : vector<16x32xi32>
    %12 = vector.broadcast %1 : vector<16x1xi32> to vector<16x32xi32>
    %13 = arith.cmpi eq, %11, %12 : vector<16x32xi32>
    %cst = arith.constant 0.000000e+00 : f32
    %14 = vector.broadcast %cst : f32 to vector<16x32xf32>
    %15 = arith.select %13, %0, %14 : vector<16x32xi1>, vector<16x32xf32>
    %cst_4 = arith.constant dense<0.000000e+00> : vector<16xf32>
    %16 = vector.multi_reduction <add>, %15, %cst_4 [1] : vector<16x32xf32> to vector<16xf32>
    %17 = vector.shape_cast %16 : vector<16xf32> to vector<16x1xf32>
    %c1_i32_5 = arith.constant 1 : i32
    %18 = vector.broadcast %c1_i32_5 : i32 to vector<16x32xi32>
    %19 = arith.cmpi eq, %11, %18 : vector<16x32xi32>
    %cst_6 = arith.constant 0.000000e+00 : f32
    %20 = vector.broadcast %cst_6 : f32 to vector<16x32xf32>
    %21 = arith.select %19, %20, %0 : vector<16x32xi1>, vector<16x32xf32>
    %cst_7 = arith.constant dense<0.000000e+00> : vector<16xf32>
    %22 = vector.multi_reduction <add>, %21, %cst_7 [1] : vector<16x32xf32> to vector<16xf32>
    %23 = vector.shape_cast %22 : vector<16xf32> to vector<16x1xf32>
    %cst_8 = arith.constant 0.899999976 : f32
    %24 = vector.broadcast %cst_8 : f32 to vector<16x1xf32>
    %25 = arith.mulf %24, %17 : vector<16x1xf32>
    %cst_9 = arith.constant -0.665202737 : f32
    %26 = vector.broadcast %cst_9 : f32 to vector<16x1xf32>
    %27 = arith.subf %26, %25 : vector<16x1xf32>
    %28 = arith.subf %23, %17 : vector<16x1xf32>
    %cst_10 = arith.constant 0.00333333341 : f32
    %29 = vector.broadcast %cst_10 : f32 to vector<16x1xf32>
    %30 = arith.mulf %29, %28 : vector<16x1xf32>
    %31 = arith.subf %27, %30 : vector<16x1xf32>
    %cst_11 = arith.constant 0.000000e+00 : f32
    %32 = vector.broadcast %cst_11 : f32 to vector<16x1xf32>
    %33 = arith.select %10, %31, %32 : vector<16x1xi1>, vector<16x1xf32>
    %34 = vector.shape_cast %33 : vector<16x1xf32> to vector<1x16x1xf32>
    %cst_12 = arith.constant dense<0.000000e+00> : vector<1xf32>
    %35 = vector.multi_reduction <add>, %34, %cst_12 [1, 2] : vector<1x16x1xf32> to vector<1xf32>
    %36 = vector.shape_cast %35 : vector<1xf32> to vector<1x1x1xf32>
    %37 = vector.extract %36[0, 0, 0] : f32 from vector<1x1x1xf32>
    %38 = tpu.iota {dimensions = array<i32: 1>} : vector<1x128xi32>
    %c0_i32 = arith.constant 0 : i32
    %39 = vector.broadcast %c0_i32 : i32 to vector<1x128xi32>
    %40 = arith.cmpi eq, %38, %39 : vector<1x128xi32>
    %cst_13 = arith.constant 0.000000e+00 : f32
    %41 = vector.broadcast %37 : f32 to vector<1x128xf32>
    %42 = vector.broadcast %cst_13 : f32 to vector<1x128xf32>
    %43 = arith.select %40, %41, %42 : vector<1x128xi1>, vector<1x128xf32>
    %c0_14 = arith.constant 0 : index
    %c0_15 = arith.constant 0 : index
    %44 = vector.load %arg3[%c0_14, %c0_15] : memref<1x128xf32, #tpu.memory_space<vmem>>, vector<1x128xf32>
    tpu.vector_store %arg3[%c0_14, %c0_15], %43 {strides = array<i32>} : memref<1x128xf32, #tpu.memory_space<vmem>>, vector<1x128xf32>,
    return
  }
  func.func @transform_0(%arg0: i32) -> (i32, i32) {
    %c0_i32 = arith.constant 0 : i32
    %c0_i32_0 = arith.constant 0 : i32
    return %arg0, %c0_i32 : i32, i32
  }
  func.func @transform_1(%arg0: i32) -> (i32, i32) {
    %c0_i32 = arith.constant 0 : i32
    %c0_i32_0 = arith.constant 0 : i32
    return %arg0, %c0_i32 : i32, i32
  }
  func.func @transform_2(%arg0: i32) -> (i32, i32) {
    %c0_i32 = arith.constant 0 : i32
    %c0_i32_0 = arith.constant 0 : i32
    return %arg0, %c0_i32 : i32, i32
  }
}

</mosaic_0001>

<bundles_post_ra>
// kernel: tpu_custom_call.1
= control target key start
LH: loop header
LB: loop body
LE: loop exit
PB: predicated region body
PF: predicated region fallthrough
CT: control target
= control target key end

     0   :  { %s169_s0 = inlined_call_operand.vmem [shape: f32[16,32], index: 0, kind: input, shape index: {}]   ;;  %s170_s1 = inlined_call_operand.vmem [shape: s32[16,1], index: 1, kind: input, shape index: {}]   ;;  %s171_s2 = inlined_call_operand.hbm [shape: f32[1,128], index: 2, kind: output, shape index: {}]  }
   0x1   :  { %v14_v0 = vld [vmem:[%s170_s1] sm:$0xff] }
   0x2   :  { %7 = vsyncpa [#allocation3], 0  ;;  %v133_v1 = vmov 0   ;;  %v15_v2 = vld [vmem:[%s170_s1 + $0x8] sm:$0xff]  ;;  %v29_v3 = vlaneseq  ;;  %v12_v5 = vld [vmem:[%s169_s0] sm:$0xff]  ;;  %vm41_vm0 = vcmask 261120  }
   0x3   :  { %106 = vset.pattern.permute.xlu0 %v133_v1  ;;  %v13_v8 = vld [vmem:[%s169_s0 + $0x8] sm:$0xff]  ;;  %vm25_vm4 = vcmp.ne.s32.totalorder %v14_v0, 1  ;;  %vm26_vm5 = vcmp.ne.s32.totalorder %v15_v2, 1  ;;  %vm69_vm6 = vcmask 7168   ;;  %s134_s0 = smov [#allocation2]   ;;  %s93_s19 = sshll.u32 %s171_s2, 4  ;;  %s94_s19 = int_to_ptr.hbm [resolvable:$true] %s93_s19 }
   0x4   :  { %32 = vperm.xlu0 %106, %v14_v0   ;;  %v30_v4 = vand.u32 127, %v29_v3  ;;  %s91_s1 = sshll.u32 %s134_s0, 4  ;;  %s92_s1 = int_to_ptr.vmem [resolvable:$true] %s91_s1 }
   0x6   :  { %vm48_vm1 = vcmp.eq.s32.totalorder %v30_v4, 1  ;;  %vm82_vm7 = vcmp.eq.s32.totalorder %v30_v4, 0 }
   0x7   :  { %v49_v6 = vsel %vm48_vm1, 0.0, %v12_v5  ;;  %v50_v9 = vsel %vm48_vm1, 0.0, %v13_v8 }
   0x8   :  { %v51_v7 = vsel %vm41_vm0, %v49_v6, 0.0  ;;  %v54_v10 = vsel %vm41_vm0, %v50_v9, 0.0 }
   0x9   :  { %52 = vadd.xlane.f32.xlu2 %v51_v7 }
   0xc   :  { %35 = vperm.xlu0 %106, %v15_v2  }
  0x11   :  { %55 = vadd.xlane.f32.xlu2 %v54_v10 }
  0x76   :  { %v33_v11 = vpop.permute.xlu0 %32 }
  0x77   :  { %vm37_vm2 = vcmp.eq.s32.totalorder %v30_v4, %v33_v11 }
  0x78   :  { %v39_v12 = vsel %vm37_vm2, %v12_v5, 0.0 }
  0x79   :  { %v42_v13 = vsel %vm41_vm0, %v39_v12, 0.0 }
  0x7a   :  { %43 = vadd.xlane.f32.xlu1 %v42_v13 }
  0x7c   :  { %v53_v17 = vpop.xlane.xlu2 %52 }
  0x7e   :  { %v36_v14 = vpop.permute.xlu0 %35 }
  0x7f   :  { %vm38_vm3 = vcmp.eq.s32.totalorder %v30_v4, %v36_v14 }
  0x80   :  { %v40_v15 = vsel %vm38_vm3, %v13_v8, 0.0 }
  0x81   :  { %v45_v16 = vsel %vm41_vm0, %v40_v15, 0.0 }
  0x82   :  { %46 = vadd.xlane.f32.xlu1 %v45_v16 }
  0x84   :  { %v56_v23 = vpop.xlane.xlu2 %55 }
  0xed   :  { %v44_v18 = vpop.xlane.xlu1 %43 }
  0xee   :  { %v57_v19 = vmul.f32 0.9, %v44_v18  ;;  %v61_v20 = vsub.f32 %v53_v17, %v44_v18 }
  0xf0   :  { %v59_v21 = vsub.f32 -0.66520274, %v57_v19  ;;  %v63_v22 = vmul.f32 0.0033333334, %v61_v20 }
  0xf2   :  { %v65_v25 = vsub.f32 %v59_v21, %v63_v22 }
  0xf4   :  { %v67_v31 = vsel %vm25_vm4, %v65_v25, 0.0 }
  0xf5   :  { %v47_v24 = vpop.xlane.xlu1 %46  ;;  %v70_v33 = vsel %vm69_vm6, %v67_v31, 0.0 }
  0xf6   :  { %v58_v26 = vmul.f32 0.9, %v47_v24  ;;  %v62_v27 = vsub.f32 %v56_v23, %v47_v24 }
  0xf8   :  { %v60_v28 = vsub.f32 -0.66520274, %v58_v26  ;;  %v64_v29 = vmul.f32 0.0033333334, %v62_v27 }
  0xfa   :  { %v66_v30 = vsub.f32 %v60_v28, %v64_v29 }
  0xfc   :  { %v68_v32 = vsel %vm26_vm5, %v66_v30, 0.0 }
  0xfd   :  { %v71_v34 = vsel %vm69_vm6, %v68_v32, 0.0 }
  0xfe   :  { %v72_v35 = vadd.f32 %v71_v34, %v70_v33 }
 0x100   :  { %73 = vadd.xlane.f32.xlu0 %v72_v35 }
 0x173   :  { %v74_v36 = vpop.xlane.xlu0 %73 }
 0x174   :  { %v75_v37 = vrot.slane %v74_v36, 4 }
 0x176   :  { %v76_v38 = vadd.f32 %v75_v37, %v74_v36 }
 0x178   :  { %v77_v39 = vrot.slane %v76_v38, 2 }
 0x17a   :  { %v78_v40 = vadd.f32 %v77_v39, %v76_v38 }
 0x17c   :  { %v79_v41 = vrot.slane %v78_v40, 1 }
 0x17e   :  { %v80_v42 = vadd.f32 %v79_v41, %v78_v40 }
 0x180   :  { %102 = vpush %v80_v42 }
 0x1b1   :  { %s103_s20 = spop %102 }
 0x1b2   :  { %v83_v43 = vstv %s103_s20 }
 0x1b3   :  { %v84_v44 = vsel %vm82_vm7, %v83_v43, 0.0 }
 0x1b4   :  { %85 = vst [vmem:[#allocation2] sm:$0x1] %v84_v44 }
 0x1b5   :  { %96 = dma.vmem_to_hbm [thread:$0]  %s92_s1, 16, %s94_s19, [#allocation3]  }
 0x1b6   :  { %131 = dma.done.wait [#allocation3], 16  }
 0x1b7   :  { %132 = vsyncadd [#allocation3], 4294967280 }
 0x1b8   :  { %101 = vsyncpa [#allocation3], 1 }

</bundles_post_ra>
